<compile_context>
chip_gen: v6e
topology: v6e:2x2x1
jax: 0.10.0
libtpu: 0.0.40
codegen_flags: <defaults>
</compile_context>

<pallas_src>
import functools

import jax
import jax.numpy as jnp
from jax.experimental import pallas as pl
from jax.experimental.pallas import tpu as pltpu


def _round_up(x, m):
    return ((x + m - 1) // m) * m


def _vmem_budget_bytes():
    """Generation-aware input-tile budget: ~1/3 of physical VMEM
    (~21 MiB on v7x's 64 MiB, ~42 MiB on v5e/v6e's 128 MiB)."""
    try:
        return int(pltpu.get_tpu_info().vmem_capacity_bytes) // 3
    except Exception:
        return 32 * 1024 * 1024


def _custom_loss_kernel(n_pred_ref, n_true_ref, e_pred_ref, e_true_ref, out_ref,
                        *, tile_n, n_rows, inv_n, inv_ne, hard_targets, needs_mask):
    pid = pl.program_id(0)

    # ---- CrossEntropy per-row (class-index targets), no log_probs materialization ----
    logits = n_pred_ref[...].astype(jnp.float32)                        # (tile_n, C)
    labels = n_true_ref[...]                                            # (tile_n, 1) int32
    m = jnp.max(logits, axis=-1, keepdims=True)                         # (tile_n, 1)
    shifted = logits - m                                                 # (tile_n, C)
    lse = jnp.log(jnp.sum(jnp.exp(shifted), axis=-1, keepdims=True))    # (tile_n, 1)
    col = jax.lax.broadcasted_iota(jnp.int32, logits.shape, 1)          # (tile_n, C)
    picked = jnp.sum(jnp.where(col == labels, shifted, 0.0),
                     axis=-1, keepdims=True)                            # (tile_n, 1)
    ce_per_row = lse - picked                                            # (tile_n, 1)

    # ---- BCE per-row (inputs are probabilities; PyTorch clamps log terms at -100) ----
    p = e_pred_ref[...].astype(jnp.float32)                             # (tile_n, E)
    y = e_true_ref[...].astype(jnp.float32)                             # (tile_n, E)
    if hard_targets:
        # Single log per element: q = p if y==1 else 1-p.
        q = jnp.where(y > 0.5, p, 1.0 - p)
        bce_el = -jnp.maximum(jnp.log(q), jnp.float32(-100.0))
    else:
        log_p = jnp.maximum(jnp.log(p), jnp.float32(-100.0))
        log_1mp = jnp.maximum(jnp.log(1.0 - p), jnp.float32(-100.0))
        bce_el = -(y * log_p + (1.0 - y) * log_1mp)
    bce_row = jnp.sum(bce_el, axis=-1, keepdims=True)                   # (tile_n, 1)

    # Per-row contribution to the final (already normalized) loss.
    row_loss = ce_per_row * jnp.float32(inv_n) + 4.0 * bce_row * jnp.float32(inv_ne)

    def _write(partial):
        # Lane-dense (1, 8, 128) output block; scalar is broadcast, reduced outside.
        out_ref[...] = jnp.full(out_ref.shape, partial, dtype=jnp.float32)

    if needs_mask:
        is_last = pid == pl.num_programs(0) - 1

        @pl.when(is_last)
        def _():
            # Mask padded rows of the final tile (select, so garbage rows are dropped).
            row_ids = pid * tile_n + jax.lax.broadcasted_iota(jnp.int32, (tile_n, 1), 0)
            valid = row_ids < n_rows
            _write(jnp.sum(jnp.where(valid, row_loss, 0.0)))

        @pl.when(jnp.logical_not(is_last))
        def _():
            _write(jnp.sum(row_loss))
    else:
        _write(jnp.sum(row_loss))


def custom_loss(n_pred, n_true, e_pred, e_true, *, tile_n=None,
                hard_targets=False, input_dtype=None):
    """Pallas implementation of CrossEntropy(n_pred, n_true) + 4 * BCE(e_pred, e_true).

    n_pred: (N, C) logits; n_true: (N,) int; e_pred/e_true: (N, E) in [0,1].
    hard_targets=True enables the single-log BCE path (valid when e_true is {0,1}).
    input_dtype=jnp.bfloat16 streams the large inputs in bf16 (~2x HBM savings on
    v5e/v6e); compute stays f32 in-kernel.
    """
    n_rows, n_classes = n_pred.shape
    n_edges = e_pred.shape[1]

    if input_dtype is not None:
        n_pred = n_pred.astype(input_dtype)
        e_pred = e_pred.astype(input_dtype)
        e_true = e_true.astype(input_dtype)

    n_true_2d = n_true.astype(jnp.int32).reshape(n_rows, 1)

    # Per-row VMEM footprint in the *input* dtypes (the f32 upcast lives only in vregs).
    bytes_per_row = (
        n_pred.dtype.itemsize * _round_up(n_classes, 128)
        + 4 * 128                                            # int32 labels, lane-padded
        + e_pred.dtype.itemsize * _round_up(n_edges, 128)
        + e_true.dtype.itemsize * _round_up(n_edges, 128)
    )

    budget = _vmem_budget_bytes()
    if tile_n is None:
        max_rows = max(8, budget // (2 * bytes_per_row))     # 2 = double buffering
        tile_n = max(8, (max_rows // 8) * 8)
        # Keep >= ~4 tiles so v7x's two TensorCores can split the 'parallel' axis.
        min_tiles = 4
        if n_rows >= min_tiles * 8:
            tile_n = min(tile_n, max(8, _round_up(pl.cdiv(n_rows, min_tiles), 8)))
        tile_n = min(tile_n, _round_up(n_rows, 8))
    tile_n = max(8, (int(tile_n) // 8) * 8)
    num_tiles = pl.cdiv(n_rows, tile_n)
    needs_mask = (n_rows % tile_n) != 0

    kernel = functools.partial(
        _custom_loss_kernel,
        tile_n=tile_n,
        n_rows=n_rows,
        inv_n=1.0 / float(n_rows),
        inv_ne=1.0 / float(n_rows * n_edges),
        hard_targets=hard_targets,
        needs_mask=needs_mask,
    )

    # Explicit VMEM limit: double-buffered input tiles + output blocks + headroom,
    # clamped to ~2/3 of physical VMEM (safe on v7x's 64 MiB).
    vmem_need = 2 * tile_n * bytes_per_row + 2 * 8 * 128 * 4
    vmem_limit = int(min(max(vmem_need + (4 << 20), 16 << 20), 2 * budget))

    bytes_accessed = (
        n_pred.size * n_pred.dtype.itemsize
        + n_true_2d.size * n_true_2d.dtype.itemsize
        + e_pred.size * e_pred.dtype.itemsize
        + e_true.size * e_true.dtype.itemsize
        + int(num_tiles) * 8 * 128 * 4
    )
    transcendentals = n_rows * (n_classes + 1) + (1 if hard_targets else 2) * n_rows * n_edges
    cost = pl.CostEstimate(
        flops=int(5 * n_rows * n_classes + 6 * n_rows * n_edges),
        transcendentals=int(transcendentals),
        bytes_accessed=int(bytes_accessed),
    )

    partials = pl.pallas_call(
        kernel,
        out_shape=jax.ShapeDtypeStruct((num_tiles, 8, 128), jnp.float32),
        grid=(num_tiles,),
        in_specs=[
            pl.BlockSpec((tile_n, n_classes), lambda i: (i, 0)),
            pl.BlockSpec((tile_n, 1), lambda i: (i, 0)),
            pl.BlockSpec((tile_n, n_edges), lambda i: (i, 0)),
            pl.BlockSpec((tile_n, n_edges), lambda i: (i, 0)),
        ],
        out_specs=pl.BlockSpec((1, 8, 128), lambda i: (i, 0, 0)),
        compiler_params=pltpu.CompilerParams(
            dimension_semantics=("parallel",),
            vmem_limit_bytes=vmem_limit,
        ),
        cost_estimate=cost,
    )(n_pred, n_true_2d, e_pred, e_true)

    # Tiny reduction over per-tile partials (one scalar per tile, already normalized).
    return jnp.sum(partials[:, 0, 0])


def _reference_loss(n_pred, n_true, e_pred, e_true):
    # Pure-JAX reference matching PyTorch semantics (for correctness check).
    log_probs = jax.nn.log_softmax(n_pred.astype(jnp.float32), axis=-1)
    ce = -jnp.mean(jnp.take_along_axis(log_probs, n_true[:, None], axis=-1))
    p = e_pred.astype(jnp.float32)
    y = e_true.astype(jnp.float32)
    bce = jnp.mean(-(y * jnp.maximum(jnp.log(p), -100.0)
                     + (1.0 - y) * jnp.maximum(jnp.log(1.0 - p), -100.0)))
    return ce + 4.0 * bce


if __name__ == "__main__":
    key = jax.random.PRNGKey(0)
    k1, k2, k3, k4 = jax.random.split(key, 4)

    # Small shapes; N=20 with tile_n=8 exercises multi-tile gridding + remainder masking.
    N, C, E = 20, 16, 128
    n_pred = jax.random.normal(k1, (N, C), dtype=jnp.float32)
    n_true = jax.random.randint(k2, (N,), 0, C, dtype=jnp.int32)
    e_pred = jax.nn.sigmoid(jax.random.normal(k3, (N, E), dtype=jnp.float32))
    e_true = jax.random.bernoulli(k4, 0.5, (N, E)).astype(jnp.float32)

    ref = _reference_loss(n_pred, n_true, e_pred, e_true)

    # Explicit small tile: 3 grid steps, last one partially masked.
    loss_tiled = custom_loss(n_pred, n_true, e_pred, e_true, tile_n=8)
    jax.block_until_ready(loss_tiled)
    assert jnp.allclose(loss_tiled, ref, rtol=1e-5, atol=1e-5), (loss_tiled, ref)

    # Auto-sized tile (single masked tile for these shapes).
    loss_auto = custom_loss(n_pred, n_true, e_pred, e_true)
    jax.block_until_ready(loss_auto)
    assert jnp.allclose(loss_auto, ref, rtol=1e-5, atol=1e-5), (loss_auto, ref)

    # Hard-target single-log BCE path (e_true is {0,1}) -- must match the two-log result.
    loss_hard = custom_loss(n_pred, n_true, e_pred, e_true, tile_n=8, hard_targets=True)
    jax.block_until_ready(loss_hard)
    assert jnp.allclose(loss_hard, ref, rtol=1e-5, atol=1e-5), (loss_hard, ref)

    # Exact-multiple row count exercises the unmasked fast path (no pl.when branch).
    N2 = 16
    ref2 = _reference_loss(n_pred[:N2], n_true[:N2], e_pred[:N2], e_true[:N2])
    loss_full = custom_loss(n_pred[:N2], n_true[:N2], e_pred[:N2], e_true[:N2], tile_n=8)
    jax.block_until_ready(loss_full)
    assert jnp.allclose(loss_full, ref2, rtol=1e-5, atol=1e-5), (loss_full, ref2)

    # bf16-streamed inputs (bandwidth saver on v5e/v6e); looser tolerance vs f32 reference.
    loss_bf16 = custom_loss(n_pred, n_true, e_pred, e_true, input_dtype=jnp.bfloat16)
    jax.block_until_ready(loss_bf16)
    assert jnp.allclose(loss_bf16, ref, rtol=2e-2, atol=2e-2), (loss_bf16, ref)

    print("KERNEL_OK")
</pallas_src>

<mosaic_0001>
module attributes {stable_mosaic.version = 11 : i64} {
  func.func @_custom_loss_kernel(%arg0: i32, %arg1: memref<8x16xf32, #tpu.memory_space<vmem>>, %arg2: memref<8x1xi32, #tpu.memory_space<vmem>>, %arg3: memref<8x128xf32, #tpu.memory_space<vmem>>, %arg4: memref<8x128xf32, #tpu.memory_space<vmem>>, %arg5: memref<1x8x128xf32, #tpu.memory_space<vmem>>) attributes {dimension_semantics = [#tpu.dimension_semantics<parallel>], iteration_bounds = array<i64: 3>, scalar_prefetch = 0 : i64, scratch_operands = 0 : i64, tpu.core_type = #tpu.core_type<tc>, window_params = [{transform_indices = @transform_0, window_bounds = array<i64: 8, 16>}, {transform_indices = @transform_1, window_bounds = array<i64: 8, 1>}, {transform_indices = @transform_2, window_bounds = array<i64: 8, 128>}, {transform_indices = @transform_3, window_bounds = array<i64: 8, 128>}, {transform_indices = @transform_4, window_bounds = array<i64: 1, 8, 128>}]} {
    %c0 = arith.constant 0 : index
    %c0_0 = arith.constant 0 : index
    %0 = vector.load %arg1[%c0, %c0_0] : memref<8x16xf32, #tpu.memory_space<vmem>>, vector<8x16xf32>
    %c0_1 = arith.constant 0 : index
    %c0_2 = arith.constant 0 : index
    %1 = vector.load %arg2[%c0_1, %c0_2] : memref<8x1xi32, #tpu.memory_space<vmem>>, vector<8x1xi32>
    %cst = arith.constant dense<0xFF800000> : vector<8xf32>
    %2 = vector.multi_reduction <maximumf>, %0, %cst [1] : vector<8x16xf32> to vector<8xf32>
    %3 = vector.shape_cast %2 : vector<8xf32> to vector<8x1xf32>
    %4 = vector.broadcast %3 : vector<8x1xf32> to vector<8x16xf32>
    %5 = arith.subf %0, %4 : vector<8x16xf32>
    %6 = math.exp %5 : vector<8x16xf32>
    %cst_3 = arith.constant dense<0.000000e+00> : vector<8xf32>
    %7 = vector.multi_reduction <add>, %6, %cst_3 [1] : vector<8x16xf32> to vector<8xf32>
    %8 = vector.shape_cast %7 : vector<8xf32> to vector<8x1xf32>
    %9 = math.log %8 : vector<8x1xf32>
    %10 = tpu.iota {dimensions = array<i32: 1>} : vector<8x16xi32>
    %11 = vector.broadcast %1 : vector<8x1xi32> to vector<8x16xi32>
    %12 = arith.cmpi eq, %10, %11 : vector<8x16xi32>
    %cst_4 = arith.constant 0.000000e+00 : f32
    %13 = vector.broadcast %cst_4 : f32 to vector<8x16xf32>
    %14 = arith.select %12, %5, %13 : vector<8x16xi1>, vector<8x16xf32>
    %cst_5 = arith.constant dense<0.000000e+00> : vector<8xf32>
    %15 = vector.multi_reduction <add>, %14, %cst_5 [1] : vector<8x16xf32> to vector<8xf32>
    %16 = vector.shape_cast %15 : vector<8xf32> to vector<8x1xf32>
    %17 = arith.subf %9, %16 : vector<8x1xf32>
    %c0_6 = arith.constant 0 : index
    %c0_7 = arith.constant 0 : index
    %18 = vector.load %arg3[%c0_6, %c0_7] : memref<8x128xf32, #tpu.memory_space<vmem>>, vector<8x128xf32>
    %c0_8 = arith.constant 0 : index
    %c0_9 = arith.constant 0 : index
    %19 = vector.load %arg4[%c0_8, %c0_9] : memref<8x128xf32, #tpu.memory_space<vmem>>, vector<8x128xf32>
    %20 = math.log %18 : vector<8x128xf32>
    %cst_10 = arith.constant -1.000000e+02 : f32
    %21 = vector.broadcast %cst_10 : f32 to vector<8x128xf32>
    %22 = arith.maximumf %20, %21 : vector<8x128xf32>
    %cst_11 = arith.constant 1.000000e+00 : f32
    %23 = vector.broadcast %cst_11 : f32 to vector<8x128xf32>
    %24 = arith.subf %23, %18 : vector<8x128xf32>
    %25 = math.log %24 : vector<8x128xf32>
    %cst_12 = arith.constant -1.000000e+02 : f32
    %26 = vector.broadcast %cst_12 : f32 to vector<8x128xf32>
    %27 = arith.maximumf %25, %26 : vector<8x128xf32>
    %28 = arith.mulf %19, %22 : vector<8x128xf32>
    %cst_13 = arith.constant 1.000000e+00 : f32
    %29 = vector.broadcast %cst_13 : f32 to vector<8x128xf32>
    %30 = arith.subf %29, %19 : vector<8x128xf32>
    %31 = arith.mulf %30, %27 : vector<8x128xf32>
    %32 = arith.addf %28, %31 : vector<8x128xf32>
    %cst_14 = arith.constant 0.000000e+00 : f32
    %33 = vector.broadcast %cst_14 : f32 to vector<8x128xf32>
    %34 = arith.subf %33, %32 : vector<8x128xf32>
    %cst_15 = arith.constant dense<0.000000e+00> : vector<8xf32>
    %35 = vector.multi_reduction <add>, %34, %cst_15 [1] : vector<8x128xf32> to vector<8xf32>
    %36 = vector.shape_cast %35 : vector<8xf32> to vector<8x1xf32>
    %cst_16 = arith.constant 5.000000e-02 : f32
    %37 = vector.broadcast %cst_16 : f32 to vector<8x1xf32>
    %38 = arith.mulf %17, %37 : vector<8x1xf32>
    %cst_17 = arith.constant 4.000000e+00 : f32
    %39 = vector.broadcast %cst_17 : f32 to vector<8x1xf32>
    %40 = arith.mulf %39, %36 : vector<8x1xf32>
    %cst_18 = arith.constant 3.906250e-04 : f32
    %41 = vector.broadcast %cst_18 : f32 to vector<8x1xf32>
    %42 = arith.mulf %40, %41 : vector<8x1xf32>
    %43 = arith.addf %38, %42 : vector<8x1xf32>
    %c2_i32 = arith.constant 2 : i32
    %44 = arith.cmpi eq, %arg0, %c2_i32 : i32
    %45 = arith.extui %44 : i1 to i32
    %c0_i32 = arith.constant 0 : i32
    %46 = arith.cmpi ne, %45, %c0_i32 : i32
    scf.if %46 {
      %c8_i32 = arith.constant 8 : i32
      %50 = arith.muli %arg0, %c8_i32 : i32
      %51 = tpu.iota {dimensions = array<i32: 0>} : vector<8x1xi32>
      %52 = vector.broadcast %50 : i32 to vector<8x1xi32>
      %53 = arith.addi %52, %51 : vector<8x1xi32>
      %c20_i32 = arith.constant 20 : i32
      %54 = vector.broadcast %c20_i32 : i32 to vector<8x1xi32>
      %55 = arith.cmpi slt, %53, %54 : vector<8x1xi32>
      %cst_20 = arith.constant 0.000000e+00 : f32
      %56 = vector.broadcast %cst_20 : f32 to vector<8x1xf32>
      %57 = arith.select %55, %43, %56 : vector<8x1xi1>, vector<8x1xf32>
      %58 = vector.shape_cast %57 : vector<8x1xf32> to vector<1x8x1xf32>
      %cst_21 = arith.constant dense<0.000000e+00> : vector<1xf32>
      %59 = vector.multi_reduction <add>, %58, %cst_21 [1, 2] : vector<1x8x1xf32> to vector<1xf32>
      %60 = vector.shape_cast %59 : vector<1xf32> to vector<1x1x1xf32>
      %61 = vector.extract %60[0, 0, 0] : f32 from vector<1x1x1xf32>
      %62 = vector.broadcast %61 : f32 to vector<1x8x128xf32>
      %c0_22 = arith.constant 0 : index
      %c0_23 = arith.constant 0 : index
      %c0_24 = arith.constant 0 : index
      %63 = vector.load %arg5[%c0_22, %c0_23, %c0_24] : memref<1x8x128xf32, #tpu.memory_space<vmem>>, vector<1x8x128xf32>
      tpu.vector_store %arg5[%c0_22, %c0_23, %c0_24], %62 {strides = array<i32>} : memref<1x8x128xf32, #tpu.memory_space<vmem>>, vector<1x8x128xf32>,
    } else {
    }
    %true = arith.constant true
    %47 = arith.xori %44, %true : i1
    %48 = arith.extui %47 : i1 to i32
    %c0_i32_19 = arith.constant 0 : i32
    %49 = arith.cmpi ne, %48, %c0_i32_19 : i32
    scf.if %49 {
      %50 = vector.shape_cast %43 : vector<8x1xf32> to vector<1x8x1xf32>
      %cst_20 = arith.constant dense<0.000000e+00> : vector<1xf32>
      %51 = vector.multi_reduction <add>, %50, %cst_20 [1, 2] : vector<1x8x1xf32> to vector<1xf32>
      %52 = vector.shape_cast %51 : vector<1xf32> to vector<1x1x1xf32>
      %53 = vector.extract %52[0, 0, 0] : f32 from vector<1x1x1xf32>
      %54 = vector.broadcast %53 : f32 to vector<1x8x128xf32>
      %c0_21 = arith.constant 0 : index
      %c0_22 = arith.constant 0 : index
      %c0_23 = arith.constant 0 : index
      %55 = vector.load %arg5[%c0_21, %c0_22, %c0_23] : memref<1x8x128xf32, #tpu.memory_space<vmem>>, vector<1x8x128xf32>
      tpu.vector_store %arg5[%c0_21, %c0_22, %c0_23], %54 {strides = array<i32>} : memref<1x8x128xf32, #tpu.memory_space<vmem>>, vector<1x8x128xf32>,
    } else {
    }
    return
  }
  func.func @transform_0(%arg0: i32) -> (i32, i32) {
    %c0_i32 = arith.constant 0 : i32
    %c0_i32_0 = arith.constant 0 : i32
    return %arg0, %c0_i32 : i32, i32
  }
  func.func @transform_1(%arg0: i32) -> (i32, i32) {
    %c0_i32 = arith.constant 0 : i32
    %c0_i32_0 = arith.constant 0 : i32
    return %arg0, %c0_i32 : i32, i32
  }
  func.func @transform_2(%arg0: i32) -> (i32, i32) {
    %c0_i32 = arith.constant 0 : i32
    %c0_i32_0 = arith.constant 0 : i32
    return %arg0, %c0_i32 : i32, i32
  }
  func.func @transform_3(%arg0: i32) -> (i32, i32) {
    %c0_i32 = arith.constant 0 : i32
    %c0_i32_0 = arith.constant 0 : i32
    return %arg0, %c0_i32 : i32, i32
  }
  func.func @transform_4(%arg0: i32) -> (i32, i32, i32) {
    %c0_i32 = arith.constant 0 : i32
    %c0_i32_0 = arith.constant 0 : i32
    %c0_i32_1 = arith.constant 0 : i32
    return %arg0, %c0_i32, %c0_i32_0 : i32, i32, i32
  }
}

</mosaic_0001>

<bundles_post_ra>
// kernel: tpu_custom_call.1
= control target key start
LH: loop header
LB: loop body
LE: loop exit
PB: predicated region body
PF: predicated region fallthrough
CT: control target
= control target key end

     0   :  { %9 = vsyncpa [#allocation3], 0  ;;  %s711_s0 = inlined_call_operand.vmem [shape: f32[20,16], index: 0, kind: input, shape index: {}]   ;;  %s712_s1 = inlined_call_operand.vmem [shape: s32[20,1], index: 1, kind: input, shape index: {}]   ;;  %s713_s2 = inlined_call_operand.vmem [shape: f32[20,128], index: 2, kind: input, shape index: {}]   ;;  %s714_s3 = inlined_call_operand.vmem [shape: f32[20,128], index: 3, kind: input, shape index: {}]   ;;  %s715_s4 = inlined_call_operand.hbm [shape: f32[3,8,128], index: 4, kind: output, shape index: {}]  }
   0x1   :  { %11 = vsyncpa [#allocation3 + $0x1], 0  ;;  %s597_s15 = smov 0   ;;  %s599_s16 = smov 0  }
   0x2   :  { %s601_s17 = smov 0   ;;  %s603_s18 = smov 0  }
   0x3 LB: > { %s618_s19 = sadd.s32 4294967295, %s568_s18   ;;  %s439_s20 = sadd.s32 4294967294, %s568_s18   ;;  %s568_s18 = sphi %s603_s18, %s721_s18   ;;  %s564_s17 = sphi %s601_s17, %s720_s17   ;;  %s560_s16 = sphi %s599_s16, %s719_s16   ;;  %s556_s15 = sphi %s597_s15, %s718_s15  }
   0x4   : > { %s622_s21 = sadd.s32 1, %s568_s18   ;;  %s128_s22 = sadd.s32 1, %s564_s17 }
   0x5   : > { %s125_s23 = ssub.s32 %s568_s18, %s622_s21  ;;  %p138_p0 = scmp.ne.s32.totalorder %s564_s17, %s560_s16 }
   0x6   : > { %p126_p1 = scmp.eq.s32.totalorder %s125_s23, 0  ;;  %p139_p2 = scmp.eq.s32.totalorder %s618_s19, 2 }
   0x7   : > { %p144_p3 = scmp.ne.s32.totalorder %s560_s16, %s556_s15  ;;  %p145_p4 = scmp.eq.s32.totalorder %s439_s20, 2 }
   0x8   : > { %s633_s24 = scalar_select %p126_p1, %s564_s17, %s128_s22  }
   0x9   : > { %p637_p5 = por %p139_p2, %p138_p0  ;;  %p641_p6 = por %p145_p4, %p144_p3 }
   0xa   : > { %p442_p7 = scmp.ge.s32.totalorder %s568_s18, 1  ;;  %p191_p8 = scmp.lt.s32.totalorder %s568_s18, 4 }
   0xc   : > { %p192_p9 = pnand %p442_p7, %p191_p8 }
   0xd   : > { %p228_p10 = scmp.lt.s32.totalorder (!%p192_p9), %s618_s19, 2  ;;  %s225_s20 = sand.u32 (!%p192_p9), 1, %s560_s16  }
   0xe   : > { %195 = sbr.rel (%p192_p9) target bundleno = 782 (0x30e), region = 36  ;;  %s443_s22 = sshll.u32 (!%p192_p9), %s225_s20, 3 }
   0xf   : > { %s667_s23 = scalar_lea.vmem (!%p192_p9), [#allocation2], %s443_s22  ;;  %p448_p11 = scmp.ne.s32.totalorder (!%p192_p9), %s618_s19, 2 }
  0x13   : > { %v570_v0 = vmov 0   ;;  %s229_s27 = scalar_select %p228_p10, %s618_s19, 2  ;;  %vm246_vm0 = vcmask 130048   ;;  %v258_v13 = vlaneseq }
  0x14   : > { %499 = vset.pattern.permute.xlu0 %v570_v0 }
  0x15   : > { %s444_s28 = sshll.u32 %s229_s27, 3  ;;  %v259_v18 = vand.u32 127, %v258_v13  ;;  %s449_s27 = sshll.u32 (!%p448_p11), %s618_s19, 3 }
  0x16   : > { %s231_s5 = scalar_lea.vmem %s711_s0, %s444_s28  ;;  %s235_s8 = scalar_lea.vmem %s712_s1, %s444_s28 }
  0x17   : > { %v244_v1 = vld [vmem:[%s231_s5] sm:$0xff]  ;;  %s239_s11 = scalar_lea.vmem %s713_s2, %s444_s28  ;;  %s243_s14 = scalar_lea.vmem %s714_s3, %s444_s28 }
  0x18   : > { %v247_v2 = vsel %vm246_vm0, %v244_v1, -inf  ;;  %v245_v3 = vld [vmem:[%s235_s8] sm:$0xff] }
  0x19   : > { %248 = vmax.xlane.f32.xlu0 %v247_v2  ;;  %v269_v4 = vld [vmem:[%s239_s11] sm:$0xff] }
  0x1a   : > { %v274_v5 = vsub.f32 1.0, %v269_v4  ;;  %500 = vlog2.f32 %v269_v4  ;;  %v270_v14 = vld [vmem:[%s243_s14] sm:$0xff] }
  0x1b   : > { %v279_v17 = vsub.f32 1.0, %v270_v14 }
  0x1c   : > { %502 = vlog2.f32 %v274_v5 }
  0x27   : > { %v501_v9 = vpop.eup %500 }
  0x28   : > { %v272_v11 = vmul.f32 0.6931472, %v501_v9 }
  0x29   : > { %v503_v10 = vpop.eup %502 }
  0x2a   : > { %v276_v12 = vmul.f32 0.6931472, %v503_v10  ;;  %v273_v15 = vmax.f32 %v272_v11, -100.0 }
  0x2c   : > { %v277_v16 = vmax.f32 %v276_v12, -100.0  ;;  %v278_v20 = vmul.f32 %v273_v15, %v270_v14 }
  0x2e   : > { %v280_v21 = vmul.f32 %v279_v17, %v277_v16 }
  0x2f   : > { %261 = vperm.xlu0 %499, %v245_v3  }
  0x30   : > { %v281_v25 = vadd.f32 %v280_v21, %v278_v20 }
  0x32   : > { %v282_v27 = vsub.f32 0.0, %v281_v25 }
  0xa2   : > { %v249_v6 = vpop.xlane.xlu0 %248 }
  0xa3   : > { %v250_v7 = vsub.f32 %v244_v1, %v249_v6 }
  0xa5   : > { %v251_v8 = vmul.f32 1.442695, %v250_v7 }
  0xa7   : > { %504 = vpow2.f32 %v251_v8 }
  0xaa   : > { %v262_v19 = vpop.permute.xlu0 %261 }
  0xab   : > { %vm263_vm1 = vcmp.eq.s32.totalorder %v259_v18, %v262_v19 }
  0xac   : > { %v264_v24 = vsel %vm263_vm1, %v250_v7, 0.0 }
  0xad   : > { %v265_v26 = vsel %vm246_vm0, %v264_v24, 0.0 }
  0xb4   : > { %v505_v22 = vpop.eup %504 }
  0xb5   : > { %v253_v23 = vsel %vm246_vm0, %v505_v22, 0.0 }
  0xb6   : > { %254 = vadd.xlane.f32.xlu1 %v253_v23 }
  0xba   : > { %266 = vadd.xlane.f32.xlu1 %v265_v26 }
  0xbe   : > { %283 = vadd.xlane.f32.xlu1 %v282_v27 }
 0x13f   : > { %v255_v28 = vpop.xlane.xlu1 %254 }
 0x140   : > { %506 = vlog2.f32 %v255_v28 }
 0x143   : > { %v267_v29 = vpop.xlane.xlu1 %266 }
 0x147   : > { %v284_v30 = vpop.xlane.xlu1 %283 }
 0x148   : > { %v286_v31 = vmul.f32 4.0, %v284_v30 }
 0x14a   : > { %v287_v35 = vmul.f32 0.000390625, %v286_v31 }
 0x14d   : > { %v507_v32 = vpop.eup %506 }
 0x14e   : > { %v257_v33 = vmul.f32 0.6931472, %v507_v32 }
 0x150   : > { %v268_v34 = vsub.f32 %v257_v33, %v267_v29  ;;  %292 = sbr.rel (%p448_p11) target bundleno = 550 (0x226), region = 40 }
 0x152   : > { %v285_v36 = vmul.f32 0.05, %v268_v34 }
 0x154   : > { %v288_v37 = vadd.f32 %v287_v35, %v285_v36 }
 0x155   : > { %v295_v38 = vshrl.u32 %v258_v13, 7  ;;  %v296_v39 = vstv %s449_s27  ;;  %vm300_vm2 = vcmask 7168  }
 0x157   : > { %v297_v40 = vadd.s32 %v296_v39, %v295_v38 }
 0x159   : > { %vm298_vm3 = vcmp.lt.s32.totalorder %v297_v40, 20 }
 0x15a   : > { %v299_v41 = vsel %vm298_vm3, %v288_v37, 0.0 }
 0x15b   : > { %v301_v42 = vsel %vm300_vm2, %v299_v41, 0.0 }
 0x15c   : > { %302 = vadd.xlane.f32.xlu0 %v301_v42 }
 0x1e5   : > { %v303_v43 = vpop.xlane.xlu0 %302 }
 0x1e6   : > { %v304_v44 = vrot.slane %v303_v43, 4 }
 0x1e8   : > { %v305_v45 = vadd.f32 %v304_v44, %v303_v43 }
 0x1ea   : > { %v306_v46 = vrot.slane %v305_v45, 2 }
 0x1ec   : > { %v307_v47 = vadd.f32 %v306_v46, %v305_v45 }
 0x1ee   : > { %v308_v48 = vrot.slane %v307_v47, 1 }
 0x1f0   : > { %v309_v49 = vadd.f32 %v308_v48, %v307_v47 }
 0x1f2   : > { %455 = vpush %v309_v49 }
 0x223   : > { %s456_s28 = spop %455 }
 0x224   : > { %v311_v50 = vstv %s456_s28 }
 0x225   : > { %312 = vst [vmem:[%s667_s23] sm:$0xff] %v311_v50 }
 0x226 PF: > { %316 = sbr.rel (%p139_p2) target bundleno = 759 (0x2f7), region = 44 }
 0x22b   : > { %vm317_vm4 = vcmask 7168  }
 0x22c   : > { %v318_v51 = vsel %vm317_vm4, %v288_v37, 0.0 }
 0x22d   : > { %319 = vadd.xlane.f32.xlu0 %v318_v51 }
 0x2b6   : > { %v320_v52 = vpop.xlane.xlu0 %319 }
 0x2b7   : > { %v321_v53 = vrot.slane %v320_v52, 4 }
 0x2b9   : > { %v322_v54 = vadd.f32 %v321_v53, %v320_v52 }
 0x2bb   : > { %v323_v55 = vrot.slane %v322_v54, 2 }
 0x2bd   : > { %v324_v56 = vadd.f32 %v323_v55, %v322_v54 }
 0x2bf   : > { %v325_v57 = vrot.slane %v324_v56, 1 }
 0x2c1   : > { %v326_v58 = vadd.f32 %v325_v57, %v324_v56 }
 0x2c3   : > { %457 = vpush %v326_v58 }
 0x2f4   : > { %s458_s29 = spop %457 }
 0x2f5   : > { %v328_v59 = vstv %s458_s29 }
 0x2f6   : > { %329 = vst [vmem:[%s667_s23] sm:$0xff] %v328_v59 }
 0x2f7 PF: > { %s452_s30 = sshll.u32 %s618_s19, 7  ;;  %s344_s8 = sshll.u32 %s667_s23, 4  ;;  %s345_s8 = int_to_ptr.vmem [resolvable:$true] %s344_s8 }
 0x2f8   : > { %s342_s7 = scalar_lea.hbm %s715_s4, %s452_s30  ;;  %s331_s9 = scalar_lea.sflag [#allocation3], %s225_s20 }
 0x2f9   : > { %s508_s10 = scalar_lea.vmem %s345_s8, 128  ;;  %s571_s11 = smov [#allocation2]  }
 0x2fa   : > { %p509_p12 = scmp.ne.s32.totalorder %s345_s8, %s508_s10  ;;  %s512_s12 = sshll.u32 %s571_s11, 4  ;;  %s513_s12 = int_to_ptr.vmem [resolvable:$false] %s512_s12 }
 0x2fb   : > { %s514_s13 = scalar_lea.vmem %s513_s12, 256  ;;  %p515_p1 = scmp.lt.s32.totalorder %s345_s8, %s513_s12 }
 0x2fc   : > { %p510_p13 = pnand %p509_p12, %p637_p5  ;;  %p516_p2 = scmp.lt.s32.totalorder %s514_s13, %s508_s10 }
 0x2fe   : > { %p511_p0 = pneg %p510_p13  ;;  %p517_p3 = por %p516_p2, %p515_p1 }
 0x300   : > { %p518_p4 = pnand %p517_p3, %p511_p0 }
 0x302   : > { %521 = shalt.err (!%p518_p4)
}
 0x303   : > { %s522_s19 = scalar_lea.hbm %s342_s7, 128  ;;  %s526_s22 = scalar_lea.hbm %s715_s4, 384 }
 0x304   : > { %p523_p7 = scmp.ne.s32.totalorder %s342_s7, %s522_s19  ;;  %p527_p10 = scmp.lt.s32.totalorder %s342_s7, %s715_s4 }
 0x305   : > { %p528_p11 = scmp.lt.s32.totalorder %s526_s22, %s522_s19 }
 0x306   : > { %p524_p8 = pnand %p523_p7, %p637_p5 }
 0x307   : > { %p529_p12 = por %p528_p11, %p527_p10 }
 0x308   : > { %p525_p9 = pneg %p524_p8 }
 0x30a   : > { %p530_p13 = pnand %p529_p12, %p525_p9 }
 0x30c   : > { %533 = shalt.err (!%p530_p13)
}
 0x30d   : > { %459 = dma.vmem_to_hbm [thread:$0]  (%p637_p5), %s345_s8, 128, %s342_s7, %s331_s9  }
 0x30e PF: > { %p465_p0 = scmp.ge.s32.totalorder %s568_s18, 2  ;;  %s356_s28 = sand.u32 1, %s556_s15  }
 0x30f   : > { %s357_s29 = scalar_lea.sflag [#allocation3], %s356_s28 }
 0x310   : > { %p462_p1 = pnand %p465_p0, %p641_p6 }
 0x312   : > { %p463_p2 = pneg %p462_p1 }
 0x314   : > { %551 = dma.done.wait (%p463_p2), %s357_s29, 128  }
 0x315   : > { %553 = vsyncadd (%p463_p2), %s357_s29, 4294967168  ;;  %p14_p3 = scmp.ge.s32.totalorder %s622_s21, 5   ;;  %s718_s15 = smov %s560_s16 }
 0x316   : > { %s719_s16 = smov %s564_s17  ;;  %s720_s17 = smov %s633_s24 }
 0x317   : > { %s721_s18 = smov %s622_s21  ;;  %16 = sbr.rel (!%p14_p3) target bundleno = 3 (0x3), region = 88 }
 0x31c   :  { %362 = vsyncpa [#allocation3], 1 }
 0x31d   :  { %364 = vsyncpa [#allocation3 + $0x1], 1 }

</bundles_post_ra>
